<compile_context>
chip_gen: v7x
topology: tpu7x:2x2x1
jax: 0.10.0
libtpu: 0.0.40
codegen_flags: <defaults>
</compile_context>

<pallas_src>
from functools import partial

import jax
import jax.numpy as jnp
from jax.experimental import pallas as pl
from jax.experimental.pallas import tpu as pltpu


def _round_up(v, m):
    return (v + m - 1) // m * m


def _net_kernel(x_ref, w1_ref, b1_ref, w2_ref, b2_ref, o_ref):
    """One row-tile of the 2-layer MLP.

    x_ref : (TM, F)  f32  streamed batch tile
    w1_ref: (F, H)   f32  resident (H = n_hidden padded to 128, zero cols)
    b1_ref: (1, H)   f32  resident
    w2_ref: (H, O)   f32  resident (O = n_output, narrow)
    b2_ref: (1, O)   f32  resident
    o_ref : (TM, O)  f32  narrow output tile (masked vst is fine: O bytes/row)
    """
    x = x_ref[...].astype(jnp.float32)              # (TM, F) (no-op when f32)
    w1 = w1_ref[...]                                # (F, H)

    # Layer 1 on the VPU: contraction dim F is tiny (2), so a couple of
    # broadcast MACs beat pushing a K=2 matmul through the 128/256-wide MXU.
    acc = x[:, 0:1] * w1[0:1, :]
    for f in range(1, x_ref.shape[1]):              # static, tiny trip count
        acc = acc + x[:, f:f + 1] * w1[f:f + 1, :]
    h = jnp.maximum(acc + b1_ref[...], 0.0)         # (TM, H) f32

    # Layer 2 on the MXU: (TM, H) @ (H, O) with f32 accumulation. MXU time is
    # negligible next to the streaming traffic, so no need to chase MXU shape.
    o = jnp.dot(h, w2_ref[...], preferred_element_type=jnp.float32)
    o_ref[...] = (o + b2_ref[...]).astype(o_ref.dtype)


def prepare_params(w1, b1, w2, b2):
    """Pad/convert parameters once (not per forward call).

    w1: (n_feature, n_hidden); b1: (1, n_hidden) or (n_hidden,);
    w2: (n_hidden, n_output);  b2: (1, n_output) or (n_output,).
    Hidden dim is zero-padded to 128 so layer-1 VPU math and the layer-2 MXU
    contraction are lane-aligned; zero padding keeps the math identical
    (b1 padding is zero and relu(0) = 0).
    """
    n_feature, n_hidden = w1.shape
    n_output = w2.shape[1]
    H = _round_up(n_hidden, 128)

    w1p = jnp.zeros((n_feature, H), jnp.float32).at[:, :n_hidden].set(
        w1.astype(jnp.float32))
    b1p = jnp.zeros((1, H), jnp.float32).at[:, :n_hidden].set(
        jnp.reshape(b1, (1, n_hidden)).astype(jnp.float32))
    w2p = jnp.zeros((H, n_output), jnp.float32).at[:n_hidden, :].set(
        w2.astype(jnp.float32))
    b2p = jnp.reshape(b2, (1, n_output)).astype(jnp.float32)
    return w1p, b1p, w2p, b2p


@partial(jax.jit, static_argnames=("tm",))
def net_forward(x, w1p, b1p, w2p, b2p, *, tm=2048):
    """x: (N, n_feature) f32; params from prepare_params().
    Returns (N, n_output) f32 == relu(x @ w1 + b1) @ w2 + b2."""
    n, n_feature = x.shape
    H = w1p.shape[1]
    n_output = w2p.shape[1]

    # Row-tile selection:
    #   * cap at 4096 so double-buffered tiles + f32 intermediates stay far
    #     under VMEM scoped limits even on v7x (64 MiB physical),
    #   * clamp so the grid has >=2 steps when N allows it -> both v7x
    #     TensorCores get work via the "parallel" batch axis,
    #   * keep a multiple of 8 (f32 sublane granularity).
    tm = max(8, min(int(tm), 4096))
    half = _round_up(pl.cdiv(n, 2), 8)
    tm_eff = min(_round_up(tm, 8), half)
    n_pad = _round_up(n, tm_eff)

    xp = x if n_pad == n else jnp.pad(x, ((0, n_pad - n), (0, 0)))
    grid = (n_pad // tm_eff,)

    flops = 2 * n_pad * H * (n_feature + n_output) + 2 * n_pad * H
    bytes_accessed = (n_pad * n_feature * 4 + n_pad * n_output * 4
                      + (w1p.size + b1p.size + w2p.size + b2p.size) * 4)

    out = pl.pallas_call(
        _net_kernel,
        out_shape=jax.ShapeDtypeStruct((n_pad, n_output), jnp.float32),
        grid=grid,
        in_specs=[
            pl.BlockSpec((tm_eff, n_feature), lambda i: (i, 0)),  # streamed x tile
            pl.BlockSpec((n_feature, H), lambda i: (0, 0)),       # resident weights
            pl.BlockSpec((1, H), lambda i: (0, 0)),
            pl.BlockSpec((H, n_output), lambda i: (0, 0)),
            pl.BlockSpec((1, n_output), lambda i: (0, 0)),
        ],
        out_specs=pl.BlockSpec((tm_eff, n_output), lambda i: (i, 0)),
        compiler_params=pltpu.CompilerParams(
            # Batch axis is fully independent -> shard across both TCs on v7x;
            # harmless on single-TC v5e/v6e.
            dimension_semantics=("parallel",),
        ),
        cost_estimate=pl.CostEstimate(
            flops=flops, transcendentals=0, bytes_accessed=bytes_accessed),
    )(xp, w1p, b1p, w2p, b2p)

    return out[:n]


def init_params(key, n_feature, n_hidden, n_output):
    """Deterministic PyTorch-style init: U(-1/sqrt(fan_in), 1/sqrt(fan_in))."""
    k1, k2, k3, k4 = jax.random.split(key, 4)
    bound1 = 1.0 / jnp.sqrt(jnp.float32(n_feature))
    bound2 = 1.0 / jnp.sqrt(jnp.float32(n_hidden))
    w1 = jax.random.uniform(k1, (n_feature, n_hidden), jnp.float32, -bound1, bound1)
    b1 = jax.random.uniform(k2, (1, n_hidden), jnp.float32, -bound1, bound1)
    w2 = jax.random.uniform(k3, (n_hidden, n_output), jnp.float32, -bound2, bound2)
    b2 = jax.random.uniform(k4, (1, n_output), jnp.float32, -bound2, bound2)
    return w1, b1, w2, b2


if __name__ == "__main__":
    key = jax.random.PRNGKey(0)
    n_feature, n_hidden, n_output = 2, 10, 2
    batch = 200          # same two-blob dataset size as the original script

    kx0, kx1, kp = jax.random.split(key, 3)
    x0 = 2.0 + jax.random.normal(kx0, (batch // 2, n_feature), jnp.float32)
    x1 = -2.0 + jax.random.normal(kx1, (batch // 2, n_feature), jnp.float32)
    x = jnp.concatenate([x0, x1], axis=0)

    w1, b1, w2, b2 = init_params(kp, n_feature, n_hidden, n_output)
    w1p, b1p, w2p, b2p = prepare_params(w1, b1, w2, b2)

    out = net_forward(x, w1p, b1p, w2p, b2p)
    jax.block_until_ready(out)
    assert out.shape == (batch, n_output)

    # Check 1: plain f32 PyTorch-semantics forward. Everything in the kernel is
    # f32 now; tolerance covers MXU pass-precision on the layer-2 contraction.
    ref_f32 = jnp.maximum(x @ w1 + b1, 0.0) @ w2 + b2
    assert jnp.allclose(out, ref_f32, atol=5e-2, rtol=5e-2), float(
        jnp.max(jnp.abs(out - ref_f32)))

    # Check 2: a smaller row tile (multi-step grid + ragged tail padding)
    # must give the same result.
    out_small_tile = net_forward(x, w1p, b1p, w2p, b2p, tm=64)
    jax.block_until_ready(out_small_tile)
    assert jnp.allclose(out, out_small_tile, atol=1e-5), float(
        jnp.max(jnp.abs(out - out_small_tile)))

    print("KERNEL_OK")
</pallas_src>

<mosaic_0001>
module attributes {stable_mosaic.version = 11 : i64} {
  func.func @_net_kernel(%arg0: i32, %arg1: memref<104x2xf32, #tpu.memory_space<vmem>>, %arg2: memref<2x128xf32, #tpu.memory_space<vmem>>, %arg3: memref<1x128xf32, #tpu.memory_space<vmem>>, %arg4: memref<128x2xf32, #tpu.memory_space<vmem>>, %arg5: memref<1x2xf32, #tpu.memory_space<vmem>>, %arg6: memref<104x2xf32, #tpu.memory_space<vmem>>) attributes {dimension_semantics = [#tpu.dimension_semantics<parallel>], iteration_bounds = array<i64: 2>, scalar_prefetch = 0 : i64, scratch_operands = 0 : i64, tpu.core_type = #tpu.core_type<tc>, window_params = [{transform_indices = @transform_0, window_bounds = array<i64: 104, 2>}, {pipeline_mode = #tpu.pipeline_mode<synchronous>, transform_indices = @transform_1, window_bounds = array<i64: 2, 128>}, {pipeline_mode = #tpu.pipeline_mode<synchronous>, transform_indices = @transform_2, window_bounds = array<i64: 1, 128>}, {pipeline_mode = #tpu.pipeline_mode<synchronous>, transform_indices = @transform_3, window_bounds = array<i64: 128, 2>}, {pipeline_mode = #tpu.pipeline_mode<synchronous>, transform_indices = @transform_4, window_bounds = array<i64: 1, 2>}, {transform_indices = @transform_5, window_bounds = array<i64: 104, 2>}]} {
    %c0 = arith.constant 0 : index
    %c0_0 = arith.constant 0 : index
    %0 = vector.load %arg1[%c0, %c0_0] : memref<104x2xf32, #tpu.memory_space<vmem>>, vector<104x2xf32>
    %c0_1 = arith.constant 0 : index
    %c0_2 = arith.constant 0 : index
    %1 = vector.load %arg2[%c0_1, %c0_2] : memref<2x128xf32, #tpu.memory_space<vmem>>, vector<2x128xf32>
    %2 = vector.extract_strided_slice %0 {offsets = [0, 0], sizes = [104, 1], strides = [1, 1]} : vector<104x2xf32> to vector<104x1xf32>
    %3 = vector.extract_strided_slice %1 {offsets = [0, 0], sizes = [1, 128], strides = [1, 1]} : vector<2x128xf32> to vector<1x128xf32>
    %4 = vector.broadcast %2 : vector<104x1xf32> to vector<104x128xf32>
    %5 = vector.broadcast %3 : vector<1x128xf32> to vector<104x128xf32>
    %6 = arith.mulf %4, %5 : vector<104x128xf32>
    %7 = vector.extract_strided_slice %0 {offsets = [0, 1], sizes = [104, 1], strides = [1, 1]} : vector<104x2xf32> to vector<104x1xf32>
    %8 = vector.extract_strided_slice %1 {offsets = [1, 0], sizes = [1, 128], strides = [1, 1]} : vector<2x128xf32> to vector<1x128xf32>
    %9 = vector.broadcast %7 : vector<104x1xf32> to vector<104x128xf32>
    %10 = vector.broadcast %8 : vector<1x128xf32> to vector<104x128xf32>
    %11 = arith.mulf %9, %10 : vector<104x128xf32>
    %12 = arith.addf %6, %11 : vector<104x128xf32>
    %c0_3 = arith.constant 0 : index
    %c0_4 = arith.constant 0 : index
    %13 = vector.load %arg3[%c0_3, %c0_4] : memref<1x128xf32, #tpu.memory_space<vmem>>, vector<1x128xf32>
    %14 = vector.broadcast %13 : vector<1x128xf32> to vector<104x128xf32>
    %15 = arith.addf %12, %14 : vector<104x128xf32>
    %cst = arith.constant 0.000000e+00 : f32
    %16 = vector.broadcast %cst : f32 to vector<104x128xf32>
    %17 = arith.maximumf %15, %16 : vector<104x128xf32>
    %c0_5 = arith.constant 0 : index
    %c0_6 = arith.constant 0 : index
    %18 = vector.load %arg4[%c0_5, %c0_6] : memref<128x2xf32, #tpu.memory_space<vmem>>, vector<128x2xf32>
    %cst_7 = arith.constant dense<0.000000e+00> : vector<104x2xf32>
    %19 = tpu.matmul %17, %18, %cst_7 {dimension_numbers = #tpu.dot_dimension_numbers<[1], [0], [0], [1], [0, 0, 1, 1], [], []>} : vector<104x128xf32>, vector<128x2xf32>, vector<104x2xf32> -> vector<104x2xf32>
    %c0_8 = arith.constant 0 : index
    %c0_9 = arith.constant 0 : index
    %20 = vector.load %arg5[%c0_8, %c0_9] : memref<1x2xf32, #tpu.memory_space<vmem>>, vector<1x2xf32>
    %21 = vector.broadcast %20 : vector<1x2xf32> to vector<104x2xf32>
    %22 = arith.addf %19, %21 : vector<104x2xf32>
    %c0_10 = arith.constant 0 : index
    %c0_11 = arith.constant 0 : index
    %23 = vector.load %arg6[%c0_10, %c0_11] : memref<104x2xf32, #tpu.memory_space<vmem>>, vector<104x2xf32>
    tpu.vector_store %arg6[%c0_10, %c0_11], %22 {strides = array<i32>} : memref<104x2xf32, #tpu.memory_space<vmem>>, vector<104x2xf32>,
    return
  }
  func.func @transform_0(%arg0: i32) -> (i32, i32) {
    %c0_i32 = arith.constant 0 : i32
    %c0_i32_0 = arith.constant 0 : i32
    return %arg0, %c0_i32 : i32, i32
  }
  func.func @transform_1(%arg0: i32) -> (i32, i32) {
    %c0_i32 = arith.constant 0 : i32
    %c0_i32_0 = arith.constant 0 : i32
    %c0_i32_1 = arith.constant 0 : i32
    return %c0_i32, %c0_i32_0 : i32, i32
  }
  func.func @transform_2(%arg0: i32) -> (i32, i32) {
    %c0_i32 = arith.constant 0 : i32
    %c0_i32_0 = arith.constant 0 : i32
    %c0_i32_1 = arith.constant 0 : i32
    return %c0_i32, %c0_i32_0 : i32, i32
  }
  func.func @transform_3(%arg0: i32) -> (i32, i32) {
    %c0_i32 = arith.constant 0 : i32
    %c0_i32_0 = arith.constant 0 : i32
    %c0_i32_1 = arith.constant 0 : i32
    return %c0_i32, %c0_i32_0 : i32, i32
  }
  func.func @transform_4(%arg0: i32) -> (i32, i32) {
    %c0_i32 = arith.constant 0 : i32
    %c0_i32_0 = arith.constant 0 : i32
    %c0_i32_1 = arith.constant 0 : i32
    return %c0_i32, %c0_i32_0 : i32, i32
  }
  func.func @transform_5(%arg0: i32) -> (i32, i32) {
    %c0_i32 = arith.constant 0 : i32
    %c0_i32_0 = arith.constant 0 : i32
    return %arg0, %c0_i32 : i32, i32
  }
}

</mosaic_0001>

<bundles_post_ra>
// kernel: net_forward.1
= control target key start
LH: loop header
LB: loop body
LE: loop exit
PB: predicated region body
PF: predicated region fallthrough
CT: control target
= control target key end

     0   :  { %s885_s18 = smov 0   ;;  %s1112_s0 = inlined_call_operand.vmem [shape: f32[208,2], index: 0, kind: input, shape index: {}]   ;;  %s1113_s1 = inlined_call_operand.vmem [shape: f32[2,128], index: 1, kind: input, shape index: {}]   ;;  %s1114_s2 = inlined_call_operand.vmem [shape: f32[1,128], index: 2, kind: input, shape index: {}]   ;;  %s1115_s3 = inlined_call_operand.vmem [shape: f32[128,2], index: 3, kind: input, shape index: {}]   ;;  %s1116_s4 = inlined_call_operand.vmem [shape: f32[1,2], index: 4, kind: input, shape index: {}]   ;;  %s1117_s5 = inlined_call_operand.vmem [shape: f32[208,2], index: 5, kind: output, shape index: {}]  }
   0x1 LB: > { %s662_s19 = sadd.s32 4294967295, %s848_s18   ;;  %p666_p0 = scmp.ge.s32.totalorder %s848_s18, 1  ;;  %s848_s18 = sphi %s885_s18, %s15_s18  }
   0x2   : > { %p188_p1 = scmp.lt.s32.totalorder %s848_s18, 3 }
   0x4   : > { %p189_p2 = pnand %p666_p0, %p188_p1 }
   0x5   : > { %s216_s20 = smul.u32 (!%p189_p2), 13, %s662_s19  ;;  %v439_v0 = vld [vmem:[%s1115_s3] sm:$0xff] (!%p189_p2)  ;;  %v440_v1 = vld [vmem:[%s1115_s3 + $0x8] sm:$0xff] (!%p189_p2)  ;;  %v850_v2 = vmov (!%p189_p2), 0   ;;  %v441_v4 = vld [vmem:[%s1115_s3 + $0x10] sm:$0xff] (!%p189_p2)  ;;  %v851_v6 = vmov (!%p189_p2), 0.0|0.0   ;;  %v307_v41 = vlaneseq (!%p189_p2) }
   0x6   : > { %192 = sbr.rel (%p189_p2) target bundleno = 439 (0x1b7), region = 40  ;;  %828 = vset.pattern.permute.xlu1 (!%p189_p2), %v850_v2  ;;  %826 = vset.pattern.permute.xlu0 (!%p189_p2), %v850_v2  ;;  %v774_v3 = vpack.c.bf16 (!%p189_p2), %v440_v1, %v439_v0  ;;  %v442_v5 = vld [vmem:[%s1115_s3 + $0x18] sm:$0xff] (!%p189_p2)  ;;  %v443_v8 = vld [vmem:[%s1115_s3 + $0x20] sm:$0xff] (!%p189_p2)  ;;  %v444_v9 = vld [vmem:[%s1115_s3 + $0x28] sm:$0xff] (!%p189_p2)  ;;  %v852_v19 = vmov (!%p189_p2), 1   ;;  %vm853_vm0 = vmmov (!%p189_p2), 0  }
   0x7   : > { %p217_p3 = scmp.lt.s32.totalorder (!%p189_p2), %s216_s20, 25  ;;  %773 = vmatprep.subr.bf16.mxu0 (!%p189_p2), %v851_v6  ;;  %797 = vmatprep.subr.bf16.mxu1 (!%p189_p2), %v851_v6  ;;  %v777_v7 = vpack.c.bf16 (!%p189_p2), %v442_v5, %v441_v4  ;;  %v780_v10 = vpack.c.bf16 (!%p189_p2), %v444_v9, %v443_v8  ;;  %v445_v11 = vld [vmem:[%s1115_s3 + $0x30] sm:$0xff] (!%p189_p2)  ;;  %v446_v14 = vld [vmem:[%s1115_s3 + $0x38] sm:$0xff] (!%p189_p2)  ;;  %v447_v17 = vld [vmem:[%s1115_s3 + $0x40] sm:$0xff] (!%p189_p2)  ;;  %v854_v28 = vmov (!%p189_p2), 0.0   ;;  %v308_v42 = vshrl.u32 (!%p189_p2), %v307_v41, 7 }
   0x8   : > { %775 = vmatpush3.bf16.msra.mxu0 (!%p189_p2), %v774_v3  ;;  %805 = vmatpush3.bf16.msra.mxu1 (!%p189_p2), %v774_v3  ;;  %v783_v16 = vpack.c.bf16 (!%p189_p2), %v446_v14, %v445_v11  ;;  %v448_v18 = vld [vmem:[%s1115_s3 + $0x48] sm:$0xff] (!%p189_p2)  ;;  %v449_v21 = vld [vmem:[%s1115_s3 + $0x50] sm:$0xff] (!%p189_p2)  ;;  %v450_v22 = vld [vmem:[%s1115_s3 + $0x58] sm:$0xff] (!%p189_p2)  ;;  %vm592_vm1 = vcmask (!%p189_p2), 15360  }
   0x9   : > { %776 = vmatprep.subr.bf16.mxu0 (!%p189_p2), %v851_v6  ;;  %798 = vmatprep.subr.bf16.mxu1 (!%p189_p2), %v851_v6  ;;  %v786_v20 = vpack.c.bf16 (!%p189_p2), %v448_v18, %v447_v17  ;;  %v789_v24 = vpack.c.bf16 (!%p189_p2), %v450_v22, %v449_v21  ;;  %v451_v26 = vld [vmem:[%s1115_s3 + $0x60] sm:$0xff] (!%p189_p2)  ;;  %v452_v27 = vld [vmem:[%s1115_s3 + $0x68] sm:$0xff] (!%p189_p2)  ;;  %v453_v31 = vld [vmem:[%s1115_s3 + $0x70] sm:$0xff] (!%p189_p2)  ;;  %v309_v43 = vsub.s32 (!%p189_p2), 0, %v308_v42  ;;  %v378_v44 = vsub.s32 (!%p189_p2), 1, %v308_v42 }
   0xa   : > { %734 = vmatprep.mubr.msk.f32.mxu0 (!%p189_p2), %vm853_vm0, %v854_v28  ;;  %755 = vmatprep.mubr.msk.f32.mxu1 (!%p189_p2), %vm853_vm0, %v854_v28  ;;  %v792_v30 = vpack.c.bf16 (!%p189_p2), %v452_v27, %v451_v26  ;;  %v454_v32 = vld [vmem:[%s1115_s3 + $0x78] sm:$0xff] (!%p189_p2)  ;;  %v241_v45 = vld [vmem:[%s1113_s1] sm:$0x3] (!%p189_p2) }
   0xb   : > { %v795_v33 = vpack.c.bf16 (!%p189_p2), %v454_v32, %v453_v31  ;;  %v1003_v48 = vrot.slane (!%p189_p2), %v241_v45, %v309_v43  ;;  %v1005_v49 = vrot.slane (!%p189_p2), %v241_v45, %v378_v44  ;;  %v1012_v54 = vld [vmem:[%s1114_s2] ss:$0 sm:$0xff] (!%p189_p2) }
   0xc   : > { %778 = vmatpush3.bf16.msra.mxu0 (!%p189_p2), %v777_v7  ;;  %806 = vmatpush3.bf16.msra.mxu1 (!%p189_p2), %v777_v7 }
   0xd   : > { %s1119_s20 = smov (!%p217_p3, %s216_s20), 25  ;;  %779 = vmatprep.subr.bf16.mxu0 %v851_v6  ;;  %799 = vmatprep.subr.bf16.mxu1 %v851_v6 }
   0xe   : > { %s667_s8 = sshll.u32 %s1119_s20, 3 }
   0xf   : > { %s925_s11 = scalar_lea.vmem %s1112_s0, %s667_s8  ;;  %s1081_s19 = scalar_lea.vmem %s1117_s5, %s667_s8 }
  0x10   : > { %v229_v12 = vld [vmem:[%s925_s11 + $0x8] sm:$0xff]  ;;  %v228_v13 = vld [vmem:[%s925_s11] sm:$0xff]  ;;  %v235_v15 = vld [vmem:[%s925_s11 + $0x38] sm:$0xff]  ;;  %781 = vmatpush3.bf16.msra.mxu0 %v780_v10  ;;  %807 = vmatpush3.bf16.msra.mxu1 %v780_v10 }
  0x11   : > { %249 = vperm.xlu1 %828, %v229_v12   ;;  %244 = vperm.xlu0 %826, %v228_v13   ;;  %v231_v23 = vld [vmem:[%s925_s11 + $0x18] sm:$0xff]  ;;  %v230_v25 = vld [vmem:[%s925_s11 + $0x10] sm:$0xff]  ;;  %v233_v29 = vld [vmem:[%s925_s11 + $0x28] sm:$0xff] }
  0x12   : > { %782 = vmatprep.subr.bf16.mxu0 %v851_v6  ;;  %800 = vmatprep.subr.bf16.mxu1 %v851_v6  ;;  %v236_v34 = vld [vmem:[%s925_s11 + $0x40] sm:$0xff]  ;;  %v237_v35 = vld [vmem:[%s925_s11 + $0x48] sm:$0xff]  ;;  %v238_v36 = vld [vmem:[%s925_s11 + $0x50] sm:$0xff] }
  0x13   : > { %v232_v37 = vld [vmem:[%s925_s11 + $0x20] sm:$0xff]  ;;  %v239_v39 = vld [vmem:[%s925_s11 + $0x58] sm:$0xff]  ;;  %v234_v40 = vld [vmem:[%s925_s11 + $0x30] sm:$0xff] }
  0x14   : > { %784 = vmatpush3.bf16.msra.mxu0 %v783_v16  ;;  %808 = vmatpush3.bf16.msra.mxu1 %v783_v16  ;;  %v240_v38 = vld [vmem:[%s925_s11 + $0x60] sm:$0xff] }
  0x15   : > { %279 = vperm.xlu1 %828, %v235_v15   ;;  %827 = vset.pattern.permute.xlu0 %v852_v19 }
  0x16   : > { %325 = vperm.xlu0 %827, %v228_v13   ;;  %785 = vmatprep.subr.bf16.mxu0 %v851_v6 }
  0x17   : > { %801 = vmatprep.subr.bf16.mxu1 %v851_v6 }
  0x18   : > { %787 = vmatpush3.bf16.msra.mxu0 %v786_v20  ;;  %809 = vmatpush3.bf16.msra.mxu1 %v786_v20 }
  0x19   : > { %829 = vset.pattern.permute.xlu1 %v852_v19  ;;  %788 = vmatprep.subr.bf16.mxu0 %v851_v6 }
  0x1a   : > { %329 = vperm.xlu1 %829, %v229_v12   ;;  %353 = vperm.xlu0 %827, %v235_v15  }
  0x1b   : > { %802 = vmatprep.subr.bf16.mxu1 %v851_v6 }
  0x1c   : > { %790 = vmatpush3.bf16.msra.mxu0 %v789_v24  ;;  %810 = vmatpush3.bf16.msra.mxu1 %v789_v24 }
  0x1d   : > { %791 = vmatprep.subr.bf16.mxu0 %v851_v6  ;;  %803 = vmatprep.subr.bf16.mxu1 %v851_v6 }
  0x1e   : > { %830 = vset.pattern.permute.xlu1 %v850_v2  ;;  %337 = vperm.xlu0 %827, %v231_v23  }
  0x1f   : > { %254 = vperm.xlu1 %830, %v230_v25  }
  0x20   : > { %793 = vmatpush3.bf16.msra.mxu0 %v792_v30  ;;  %811 = vmatpush3.bf16.msra.mxu1 %v792_v30 }
  0x21   : > { %794 = vmatprep.subr.bf16.mxu0 %v851_v6  ;;  %804 = vmatprep.subr.bf16.mxu1 %v851_v6 }
  0x22   : > { %345 = vperm.xlu0 %827, %v233_v29  }
  0x23   : > { %831 = vset.pattern.permute.xlu1 %v852_v19 }
  0x24   : > { %333 = vperm.xlu1 %831, %v230_v25   ;;  %796 = vmatpush3.bf16.msra.mxu0 %v795_v33 }
  0x25   : > { %812 = vmatpush3.bf16.msra.mxu1 %v795_v33 }
  0x26   : > { %837 = vset.pattern.permute.xlu0 %v850_v2 }
  0x27   : > { %284 = vperm.xlu0 %837, %v236_v34  }
  0x28   : > { %357 = vperm.xlu1 %831, %v236_v34  }
  0x2b   : > { %259 = vperm.xlu0 %837, %v231_v23  }
  0x2c   : > { %832 = vset.pattern.permute.xlu1 %v850_v2 }
  0x2d   : > { %289 = vperm.xlu1 %832, %v237_v35  }
  0x2f   : > { %294 = vperm.xlu0 %837, %v238_v36  }
  0x31   : > { %833 = vset.pattern.permute.xlu1 %v852_v19 }
  0x32   : > { %361 = vperm.xlu1 %833, %v237_v35  }
  0x33   : > { %269 = vperm.xlu0 %837, %v233_v29  }
  0x36   : > { %834 = vset.pattern.permute.xlu1 %v850_v2 }
  0x37   : > { %264 = vperm.xlu1 %834, %v232_v37   ;;  %304 = vperm.xlu0 %837, %v240_v38  }
  0x3b   : > { %835 = vset.pattern.permute.xlu1 %v852_v19  ;;  %841 = vset.pattern.permute.xlu0 %v852_v19 }
  0x3c   : > { %341 = vperm.xlu1 %835, %v232_v37  }
  0x40   : > { %365 = vperm.xlu1 %835, %v238_v36  }
  0x44   : > { %836 = vset.pattern.permute.xlu1 %v850_v2 }
  0x45   : > { %299 = vperm.xlu1 %836, %v239_v39  }
  0x49   : > { %838 = vset.pattern.permute.xlu1 %v852_v19 }
  0x4a   : > { %369 = vperm.xlu1 %838, %v239_v39  }
  0x4e   : > { %839 = vset.pattern.permute.xlu1 %v850_v2 }
  0x4f   : > { %274 = vperm.xlu1 %839, %v234_v40  }
  0x53   : > { %840 = vset.pattern.permute.xlu1 %v852_v19 }
  0x54   : > { %349 = vperm.xlu1 %840, %v234_v40  }
  0x58   : > { %373 = vperm.xlu1 %840, %v240_v38  }
  0x90   : > { %v250_v46 = vpop.permute.xlu1 %249  ;;  %v245_v47 = vpop.permute.xlu0 %244 }
  0x91   : > { %v311_v50 = vmul.f32 %v1003_v48, %v245_v47  ;;  %v312_v56 = vmul.f32 %v1003_v48, %v250_v46 }
  0x94   : > { %v280_v51 = vpop.permute.xlu1 %279 }
  0x95   : > { %v326_v52 = vpop.permute.xlu0 %325  ;;  %v318_v59 = vmul.f32 %v1003_v48, %v280_v51 }
  0x96   : > { %v380_v53 = vmul.f32 %v1005_v49, %v326_v52 }
  0x98   : > { %v393_v55 = vadd.f32 %v380_v53, %v311_v50 }
  0x99   : > { %v330_v57 = vpop.permute.xlu1 %329  ;;  %v354_v58 = vpop.permute.xlu0 %353 }
  0x9a   : > { %v381_v60 = vmul.f32 %v1005_v49, %v330_v57  ;;  %v387_v61 = vmul.f32 %v1005_v49, %v354_v58  ;;  %v413_v62 = vadd.f32 %v1012_v54, %v393_v55 }
  0x9c   : > { %v394_v63 = vadd.f32 %v381_v60, %v312_v56  ;;  %v400_v0 = vadd.f32 %v387_v61, %v318_v59  ;;  %v426_v1 = vmax.f32 %v413_v62, 0.0 }
  0x9d   : > { %v338_v2 = vpop.permute.xlu0 %337 }
  0x9e   : > { %v255_v3 = vpop.permute.xlu1 %254  ;;  %735 = vmatmul.mubr.f32.vlgmr.msra.gmra.mrb[0].mxu0 %v426_v1  ;;  %v414_v4 = vadd.f32 %v1012_v54, %v394_v63  ;;  %v420_v5 = vadd.f32 %v1012_v54, %v400_v0  ;;  %v383_v18 = vmul.f32 %v1005_v49, %v338_v2 }
  0x9f   : > { %737 = vmatprep.mubr.msk.f32.mxu0 %vm853_vm0, %v854_v28  ;;  %v313_v10 = vmul.f32 %v1003_v48, %v255_v3 }
  0xa0   : > { %v427_v6 = vmax.f32 %v414_v4, 0.0  ;;  %v433_v7 = vmax.f32 %v420_v5, 0.0 }
  0xa1   : > { %v346_v8 = vpop.permute.xlu0 %345 }
  0xa2   : > { %738 = vmatmul.mubr.f32.gmra.mrb[2].mxu0 %v427_v6  ;;  %756 = vmatmul.mubr.f32.vlgmr.msra.gmra.mrb[0].mxu1 %v433_v7  ;;  %v385_v39 = vmul.f32 %v1005_v49, %v346_v8 }
  0xa3   : > { %v334_v9 = vpop.permute.xlu1 %333  ;;  %740 = vmatprep.mubr.msk.f32.mxu0 %vm853_vm0, %v854_v28  ;;  %758 = vmatprep.mubr.msk.f32.mxu1 %vm853_vm0, %v854_v28 }
  0xa4   : > { %v382_v11 = vmul.f32 %v1005_v49, %v334_v9 }
  0xa6   : > { %v395_v12 = vadd.f32 %v382_v11, %v313_v10  ;;  %v285_v13 = vpop.permute.xlu0 %284 }
  0xa7   : > { %v358_v14 = vpop.permute.xlu1 %357  ;;  %v319_v15 = vmul.f32 %v1003_v48, %v285_v13 }
  0xa8   : > { %v388_v16 = vmul.f32 %v1005_v49, %v358_v14  ;;  %v415_v17 = vadd.f32 %v1012_v54, %v395_v12 }
  0xaa   : > { %v401_v19 = vadd.f32 %v388_v16, %v319_v15  ;;  %v428_v20 = vmax.f32 %v415_v17, 0.0  ;;  %v260_v21 = vpop.permute.xlu0 %259  ;;  %v670_v15 = vld [vmem:[%s1116_s4] ss:$0 sm:$0xff] }
  0xab   : > { %v314_v22 = vmul.f32 %v1003_v48, %v260_v21 }
  0xac   : > { %v290_v23 = vpop.permute.xlu1 %289  ;;  %741 = vmatmul.mubr.f32.gmra.mrb[4].mxu0 %v428_v20  ;;  %v421_v24 = vadd.f32 %v1012_v54, %v401_v19 }
  0xad   : > { %v396_v25 = vadd.f32 %v383_v18, %v314_v22  ;;  %743 = vmatprep.mubr.msk.f32.mxu0 %vm853_vm0, %v854_v28  ;;  %v320_v32 = vmul.f32 %v1003_v48, %v290_v23 }
  0xae   : > { %v434_v26 = vmax.f32 %v421_v24, 0.0  ;;  %v295_v30 = vpop.permute.xlu0 %294 }
  0xaf   : > { %v416_v27 = vadd.f32 %v1012_v54, %v396_v25  ;;  %v321_v44 = vmul.f32 %v1003_v48, %v295_v30 }
  0xb0   : > { %759 = vmatmul.mubr.f32.gmra.mrb[2].mxu1 %v434_v26 }
  0xb1   : > { %v362_v29 = vpop.permute.xlu1 %361  ;;  %761 = vmatprep.mubr.msk.f32.mxu1 %vm853_vm0, %v854_v28  ;;  %v429_v31 = vmax.f32 %v416_v27, 0.0 }
  0xb2   : > { %v389_v33 = vmul.f32 %v1005_v49, %v362_v29  ;;  %v270_v37 = vpop.permute.xlu0 %269 }
  0xb3   : > { %744 = vmatmul.mubr.f32.gmra.mrb[6].mxu0 %v429_v31  ;;  %v316_v40 = vmul.f32 %v1003_v48, %v270_v37 }
  0xb4   : > { %v402_v34 = vadd.f32 %v389_v33, %v320_v32  ;;  %746 = vmatprep.mubr.msk.f32.mxu0 %vm853_vm0, %v854_v28 }
  0xb5   : > { %v398_v45 = vadd.f32 %v385_v39, %v316_v40 }
  0xb6   : > { %v265_v35 = vpop.permute.xlu1 %264  ;;  %v422_v36 = vadd.f32 %v1012_v54, %v402_v34  ;;  %v305_v6 = vpop.permute.xlu0 %304 }
  0xb7   : > { %v315_v42 = vmul.f32 %v1003_v48, %v265_v35  ;;  %v418_v55 = vadd.f32 %v1012_v54, %v398_v45  ;;  %v323_v9 = vmul.f32 %v1003_v48, %v305_v6 }
  0xb8   : > { %v435_v38 = vmax.f32 %v422_v36, 0.0 }
  0xb9   : > { %v431_v58 = vmax.f32 %v418_v55, 0.0 }
  0xba   : > { %762 = vmatmul.mubr.f32.gmra.mrb[4].mxu1 %v435_v38 }
  0xbb   : > { %v342_v41 = vpop.permute.xlu1 %341  ;;  %764 = vmatprep.mubr.msk.f32.mxu1 %vm853_vm0, %v854_v28 }
  0xbc   : > { %v384_v43 = vmul.f32 %v1005_v49, %v342_v41 }
  0xbe   : > { %v397_v46 = vadd.f32 %v384_v43, %v315_v42 }
  0xbf   : > { %v366_v47 = vpop.permute.xlu1 %365 }
  0xc0   : > { %v390_v50 = vmul.f32 %v1005_v49, %v366_v47  ;;  %v417_v51 = vadd.f32 %v1012_v54, %v397_v46 }
  0xc2   : > { %v403_v52 = vadd.f32 %v390_v50, %v321_v44  ;;  %v430_v53 = vmax.f32 %v417_v51, 0.0 }
  0xc4   : > { %v300_v56 = vpop.permute.xlu1 %299  ;;  %747 = vmatmul.mubr.f32.gmra.mrb[8].mxu0 %v430_v53  ;;  %v423_v57 = vadd.f32 %v1012_v54, %v403_v52 }
  0xc5   : > { %749 = vmatprep.mubr.msk.f32.mxu0 %vm853_vm0, %v854_v28  ;;  %v322_v61 = vmul.f32 %v1003_v48, %v300_v56 }
  0xc6   : > { %v436_v59 = vmax.f32 %v423_v57, 0.0 }
  0xc8   : > { %750 = vmatmul.mubr.f32.gmra.mrb[10].mxu0 %v431_v58  ;;  %765 = vmatmul.mubr.f32.gmra.mrb[6].mxu1 %v436_v59 }
  0xc9   : > { %v370_v60 = vpop.permute.xlu1 %369  ;;  %767 = vmatprep.mubr.msk.f32.mxu1 %vm853_vm0, %v854_v28  ;;  %752 = vmatprep.mubr.msk.f32.mxu0 %vm853_vm0, %v854_v28 }
  0xca   : > { %v391_v62 = vmul.f32 %v1005_v49, %v370_v60 }
  0xcc   : > { %v404_v63 = vadd.f32 %v391_v62, %v322_v61 }
  0xce   : > { %v275_v0 = vpop.permute.xlu1 %274  ;;  %v424_v1 = vadd.f32 %v1012_v54, %v404_v63 }
  0xcf   : > { %v317_v4 = vmul.f32 %v1003_v48, %v275_v0 }
  0xd0   : > { %v437_v2 = vmax.f32 %v424_v1, 0.0 }
  0xd2   : > { %768 = vmatmul.mubr.f32.gmra.mrb[8].mxu1 %v437_v2 }
  0xd3   : > { %v350_v3 = vpop.permute.xlu1 %349  ;;  %770 = vmatprep.mubr.msk.f32.mxu1 %vm853_vm0, %v854_v28 }
  0xd4   : > { %v386_v5 = vmul.f32 %v1005_v49, %v350_v3 }
  0xd6   : > { %v399_v7 = vadd.f32 %v386_v5, %v317_v4 }
  0xd7   : > { %v374_v8 = vpop.permute.xlu1 %373 }
  0xd8   : > { %v392_v10 = vmul.f32 %v1005_v49, %v374_v8  ;;  %v419_v11 = vadd.f32 %v1012_v54, %v399_v7 }
  0xda   : > { %v405_v12 = vadd.f32 %v392_v10, %v323_v9  ;;  %v432_v13 = vmax.f32 %v419_v11, 0.0 }
  0xdc   : > { %753 = vmatmul.mubr.f32.gmra.mrb[12].mxu0 %v432_v13  ;;  %v425_v14 = vadd.f32 %v1012_v54, %v405_v12 }
  0xde   : > { %v438_v28 = vmax.f32 %v425_v14, 0.0 }
  0xe0   : > { %771 = vmatmul.mubr.f32.gmra.mrb[10].mxu1 %v438_v28 }
 0x171   : > { %v528_v16 = vpop.f32.mrb[0].mxu0 }
 0x172   : > { %v529_v17 = vadd.f32 %v670_v15, %v528_v16  ;;  %v736_v18 = vpop.f32.mrb[1].mxu0 }
 0x174   : > { %593 = vst.msk [vmem:[%s1081_s19] sm:$0xff] %vm592_vm1, %v529_v17 }
 0x175   : > { %v533_v48 = vpop.f32.mrb[2].mxu0  ;;  %v563_v49 = vpop.f32.mrb[0].mxu1 }
 0x176   : > { %v534_v54 = vadd.f32 %v670_v15, %v533_v48  ;;  %v564_v19 = vadd.f32 %v670_v15, %v563_v49  ;;  %v739_v20 = vpop.f32.mrb[3].mxu0  ;;  %v757_v21 = vpop.f32.mrb[1].mxu1 }
 0x178   : > { %594 = vst.msk [vmem:[%s1081_s19 + $0x8] sm:$0xff] %vm592_vm1, %v534_v54  ;;  %600 = vst.msk [vmem:[%s1081_s19 + $0x38] sm:$0xff] %vm592_vm1, %v564_v19 }
 0x17f   : > { %v538_v22 = vpop.f32.mrb[4].mxu0 }
 0x180   : > { %v539_v23 = vadd.f32 %v670_v15, %v538_v22  ;;  %v742_v24 = vpop.f32.mrb[5].mxu0 }
 0x182   : > { %595 = vst.msk [vmem:[%s1081_s19 + $0x10] sm:$0xff] %vm592_vm1, %v539_v23 }
 0x183   : > { %v568_v25 = vpop.f32.mrb[2].mxu1 }
 0x184   : > { %v569_v26 = vadd.f32 %v670_v15, %v568_v25  ;;  %v760_v27 = vpop.f32.mrb[3].mxu1 }
 0x186   : > { %601 = vst.msk [vmem:[%s1081_s19 + $0x40] sm:$0xff] %vm592_vm1, %v569_v26  ;;  %v543_v29 = vpop.f32.mrb[6].mxu0 }
 0x187   : > { %v544_v30 = vadd.f32 %v670_v15, %v543_v29  ;;  %v745_v31 = vpop.f32.mrb[7].mxu0 }
 0x189   : > { %596 = vst.msk [vmem:[%s1081_s19 + $0x18] sm:$0xff] %vm592_vm1, %v544_v30 }
 0x18d   : > { %v573_v32 = vpop.f32.mrb[4].mxu1 }
 0x18e   : > { %v574_v33 = vadd.f32 %v670_v15, %v573_v32  ;;  %v763_v34 = vpop.f32.mrb[5].mxu1 }
 0x190   : > { %602 = vst.msk [vmem:[%s1081_s19 + $0x48] sm:$0xff] %vm592_vm1, %v574_v33 }
 0x197   : > { %v548_v35 = vpop.f32.mrb[8].mxu0 }
 0x198   : > { %v549_v36 = vadd.f32 %v670_v15, %v548_v35  ;;  %v748_v37 = vpop.f32.mrb[9].mxu0 }
 0x19a   : > { %597 = vst.msk [vmem:[%s1081_s19 + $0x20] sm:$0xff] %vm592_vm1, %v549_v36 }
 0x19b   : > { %v553_v38 = vpop.f32.mrb[10].mxu0  ;;  %v578_v39 = vpop.f32.mrb[6].mxu1 }
 0x19c   : > { %v554_v40 = vadd.f32 %v670_v15, %v553_v38  ;;  %v579_v41 = vadd.f32 %v670_v15, %v578_v39  ;;  %v751_v42 = vpop.f32.mrb[11].mxu0  ;;  %v766_v43 = vpop.f32.mrb[7].mxu1 }
 0x19e   : > { %598 = vst.msk [vmem:[%s1081_s19 + $0x28] sm:$0xff] %vm592_vm1, %v554_v40  ;;  %603 = vst.msk [vmem:[%s1081_s19 + $0x50] sm:$0xff] %vm592_vm1, %v579_v41 }
 0x1a5   : > { %v583_v44 = vpop.f32.mrb[8].mxu1 }
 0x1a6   : > { %v584_v45 = vadd.f32 %v670_v15, %v583_v44  ;;  %v769_v46 = vpop.f32.mrb[9].mxu1 }
 0x1a8   : > { %604 = vst.msk [vmem:[%s1081_s19 + $0x58] sm:$0xff] %vm592_vm1, %v584_v45 }
 0x1af   : > { %v558_v47 = vpop.f32.mrb[12].mxu0 }
 0x1b0   : > { %v559_v50 = vadd.f32 %v670_v15, %v558_v47  ;;  %v754_v51 = vpop.f32.mrb[13].mxu0 }
 0x1b2   : > { %599 = vst.msk [vmem:[%s1081_s19 + $0x30] sm:$0xff] %vm592_vm1, %v559_v50 }
 0x1b3   : > { %v588_v52 = vpop.f32.mrb[10].mxu1 }
 0x1b4   : > { %v589_v53 = vadd.f32 %v670_v15, %v588_v52  ;;  %v772_v55 = vpop.f32.mrb[11].mxu1 }
 0x1b6   : > { %605 = vst.msk [vmem:[%s1081_s19 + $0x60] sm:$0xff] %vm592_vm1, %v589_v53 }
 0x1b7 PF: > { %s15_s18 = sadd.s32 1, %s848_s18  }
 0x1b8   : > { %p12_p4 = scmp.ge.s32.totalorder %s15_s18, 4  }
 0x1ba   :  { %14 = sbr.rel (!%p12_p4) target bundleno = 1 (0x1), region = 70 }

</bundles_post_ra>
